<compile_context>
chip_gen: v6e
topology: v6e:2x2x1
jax: 0.10.0
libtpu: 0.0.40
codegen_flags: <defaults>
</compile_context>

<pallas_src>
import jax
import jax.numpy as jnp
from jax.experimental import pallas as pl
from jax.experimental.pallas import tpu as pltpu

MAT_DIFF_LOSS_SCALE = 0.001


def _get_loss_kernel(pred_ref, target_ref, trans_ref, out_ref, acc_ref):
    i = pl.program_id(0)

    # ---- init running sums (NLL sum, Frobenius-norm sum) ----
    @pl.when(i == 0)
    def _():
        acc_ref[0] = jnp.float32(0.0)
        acc_ref[1] = jnp.float32(0.0)

    # ---- NLL partial sum over this batch tile ----
    pred = pred_ref[...]                       # (bB, C) f32 log-probs
    tgt = target_ref[...]                      # (bB, 1) i32
    bB, C = pred.shape
    cls_ids = jax.lax.broadcasted_iota(jnp.int32, (bB, C), 1)
    onehot = (cls_ids == tgt).astype(jnp.float32)            # (bB, C)
    nll_part = -jnp.sum(pred * onehot)

    # ---- feature-transform regularizer partial sum ----
    trans = trans_ref[...]                     # (bB, d, d) f32
    d = trans.shape[1]
    # bmm(trans, trans.transpose(2,1)) -> Gram matrices on the MXU.
    # TODO(synk): pack 2-4 batch matrices along M to better fill the 256-wide
    # MXU on v6e/v7x (secondary win only; kernel is HBM-bound).
    gram = jnp.einsum('bij,bkj->bik', trans, trans,
                      preferred_element_type=jnp.float32)     # (bB, d, d)
    # ||G - I||_F^2 = ||G||_F^2 - 2*tr(G) + d,  tr(G_b) = ||trans_b||_F^2
    g2 = jnp.sum(jnp.sum(gram * gram, axis=2), axis=1, keepdims=True)     # (bB, 1)
    tr = jnp.sum(jnp.sum(trans * trans, axis=2), axis=1, keepdims=True)   # (bB, 1)
    sq = g2 - 2.0 * tr + jnp.float32(d)
    frob_part = jnp.sum(jnp.sqrt(jnp.maximum(sq, 0.0)))

    acc_ref[0] = acc_ref[0] + nll_part
    acc_ref[1] = acc_ref[1] + frob_part

    # ---- finalize: means over the full batch, combine, write scalar ----
    @pl.when(i == pl.num_programs(0) - 1)
    def _():
        b_total = jnp.asarray(bB * pl.num_programs(0), dtype=jnp.float32)
        nll = acc_ref[0] / b_total
        mat_diff = acc_ref[1] / b_total
        out_ref[0, 0] = nll + mat_diff * jnp.float32(MAT_DIFF_LOSS_SCALE)


def _pick_batch_tile(B, max_tile=128):
    # Tile batch so 2 inputs x 2 pipeline buffers stay well under scoped VMEM
    # on every generation (v5e 16 MiB default, v7x 64 MiB physical).
    if B <= max_tile:
        return B
    for bB in range(max_tile, 0, -1):
        if B % bB == 0 and bB % 8 == 0:
            return bB
    return B


def get_loss(pred, target, trans_feat, batch_tile=None):
    """pred: (B, C) f32 log-probs, target: (B,) int, trans_feat: (B, d, d) f32."""
    pred = pred.astype(jnp.float32)
    target2d = target.astype(jnp.int32).reshape(-1, 1)        # (B, 1)
    trans_feat = trans_feat.astype(jnp.float32)

    B, C = pred.shape
    d = trans_feat.shape[1]
    bB = _pick_batch_tile(B) if batch_tile is None else batch_tile
    assert B % bB == 0, (B, bB)
    grid = (B // bB,)

    out = pl.pallas_call(
        _get_loss_kernel,
        out_shape=jax.ShapeDtypeStruct((1, 1), jnp.float32),
        grid_spec=pltpu.PrefetchScalarGridSpec(
            num_scalar_prefetch=0,
            grid=grid,
            in_specs=[
                pl.BlockSpec((bB, C), lambda i: (i, 0)),
                pl.BlockSpec((bB, 1), lambda i: (i, 0)),
                pl.BlockSpec((bB, d, d), lambda i: (i, 0, 0)),
            ],
            out_specs=pl.BlockSpec(memory_space=pltpu.MemorySpace.SMEM),
            scratch_shapes=[pltpu.SMEM((2,), jnp.float32)],
        ),
        compiler_params=pltpu.CompilerParams(
            dimension_semantics=("arbitrary",)),
    )(pred, target2d, trans_feat)
    return out[0, 0]


def _reference(pred, target, trans_feat):
    # plain-JAX reference mirroring the PyTorch module
    B = pred.shape[0]
    nll = -jnp.mean(pred[jnp.arange(B), target])
    d = trans_feat.shape[1]
    gram = jnp.einsum('bij,bkj->bik', trans_feat, trans_feat)
    diff = gram - jnp.eye(d)[None]
    mat_diff = jnp.mean(jnp.sqrt(jnp.sum(diff * diff, axis=(1, 2))))
    return nll + mat_diff * MAT_DIFF_LOSS_SCALE


if __name__ == "__main__":
    key = jax.random.PRNGKey(0)
    k1, k2, k3 = jax.random.split(key, 3)

    # Test 1: tiny shapes (single grid step)
    B, C, d = 2, 16, 64  # batch, num classes, feature-transform dim
    logits = jax.random.normal(k1, (B, C), dtype=jnp.float32)
    pred = jax.nn.log_softmax(logits, axis=-1)               # log-probs like PointNet head
    target = jax.random.randint(k2, (B,), 0, C, dtype=jnp.int32)
    trans_feat = jax.random.normal(k3, (B, d, d), dtype=jnp.float32) * 0.1

    out = jax.block_until_ready(get_loss(pred, target, trans_feat))
    ref = _reference(pred, target, trans_feat)
    assert jnp.allclose(out, ref, rtol=1e-5, atol=1e-5), (out, ref)

    # Test 2: exercise the gridded accumulator path (B=16, batch_tile=8 -> grid=(2,))
    k4, k5, k6 = jax.random.split(jax.random.PRNGKey(1), 3)
    B2 = 16
    logits2 = jax.random.normal(k4, (B2, C), dtype=jnp.float32)
    pred2 = jax.nn.log_softmax(logits2, axis=-1)
    target2 = jax.random.randint(k5, (B2,), 0, C, dtype=jnp.int32)
    trans2 = jax.random.normal(k6, (B2, d, d), dtype=jnp.float32) * 0.1

    out2 = jax.block_until_ready(get_loss(pred2, target2, trans2, batch_tile=8))
    ref2 = _reference(pred2, target2, trans2)
    assert jnp.allclose(out2, ref2, rtol=1e-5, atol=1e-5), (out2, ref2)

    print("KERNEL_OK")
</pallas_src>

<mosaic_0001>
module attributes {stable_mosaic.version = 11 : i64} {
  func.func @_get_loss_kernel(%arg0: i32, %arg1: memref<2x16xf32, #tpu.memory_space<vmem>>, %arg2: memref<2x1xi32, #tpu.memory_space<vmem>>, %arg3: memref<2x64x64xf32, #tpu.memory_space<vmem>>, %arg4: memref<1x1xf32, #tpu.memory_space<smem>>, %arg5: memref<2xf32, #tpu.memory_space<smem>>) attributes {dimension_semantics = [#tpu.dimension_semantics<arbitrary>], iteration_bounds = array<i64: 1>, scalar_prefetch = 0 : i64, scratch_operands = 1 : i64, tpu.core_type = #tpu.core_type<tc>, window_params = [{transform_indices = @transform_0, window_bounds = array<i64: 2, 16>}, {transform_indices = @transform_1, window_bounds = array<i64: 2, 1>}, {transform_indices = @transform_2, window_bounds = array<i64: 2, 64, 64>}, {transform_indices = @transform_3, window_bounds = array<i64: 1, 1>}]} {
    %c0_i32 = arith.constant 0 : i32
    %0 = arith.cmpi eq, %arg0, %c0_i32 : i32
    %1 = arith.extui %0 : i1 to i32
    %c0_i32_0 = arith.constant 0 : i32
    %2 = arith.cmpi ne, %1, %c0_i32_0 : i32
    scf.if %2 {
      %cst_22 = arith.constant 0.000000e+00 : f32
      %c0_23 = arith.constant 0 : index
      %47 = memref.load %arg5[%c0_23] : memref<2xf32, #tpu.memory_space<smem>>
      memref.store %cst_22, %arg5[%c0_23] : memref<2xf32, #tpu.memory_space<smem>>
      %cst_24 = arith.constant 0.000000e+00 : f32
      %c1_25 = arith.constant 1 : index
      %48 = memref.load %arg5[%c1_25] : memref<2xf32, #tpu.memory_space<smem>>
      memref.store %cst_24, %arg5[%c1_25] : memref<2xf32, #tpu.memory_space<smem>>
    } else {
    }
    %c0 = arith.constant 0 : index
    %c0_1 = arith.constant 0 : index
    %3 = vector.load %arg1[%c0, %c0_1] : memref<2x16xf32, #tpu.memory_space<vmem>>, vector<2x16xf32>
    %c0_2 = arith.constant 0 : index
    %c0_3 = arith.constant 0 : index
    %4 = vector.load %arg2[%c0_2, %c0_3] : memref<2x1xi32, #tpu.memory_space<vmem>>, vector<2x1xi32>
    %5 = tpu.iota {dimensions = array<i32: 1>} : vector<2x16xi32>
    %6 = vector.broadcast %4 : vector<2x1xi32> to vector<2x16xi32>
    %7 = arith.cmpi eq, %5, %6 : vector<2x16xi32>
    %8 = arith.extui %7 : vector<2x16xi1> to vector<2x16xi32>
    %9 = arith.sitofp %8 : vector<2x16xi32> to vector<2x16xf32>
    %10 = arith.mulf %3, %9 : vector<2x16xf32>
    %11 = vector.shape_cast %10 : vector<2x16xf32> to vector<1x2x16xf32>
    %cst = arith.constant dense<0.000000e+00> : vector<1xf32>
    %12 = vector.multi_reduction <add>, %11, %cst [1, 2] : vector<1x2x16xf32> to vector<1xf32>
    %13 = vector.shape_cast %12 : vector<1xf32> to vector<1x1x1xf32>
    %14 = vector.extract %13[0, 0, 0] : f32 from vector<1x1x1xf32>
    %cst_4 = arith.constant 0.000000e+00 : f32
    %15 = arith.subf %cst_4, %14 : f32
    %c0_5 = arith.constant 0 : index
    %c0_6 = arith.constant 0 : index
    %c0_7 = arith.constant 0 : index
    %16 = vector.load %arg3[%c0_5, %c0_6, %c0_7] : memref<2x64x64xf32, #tpu.memory_space<vmem>>, vector<2x64x64xf32>
    "tpu.trace_start"() <{level = 10 : i32, message = "bij,bkj->bik"}> : () -> ()
    %cst_8 = arith.constant dense<0.000000e+00> : vector<2x64x64xf32>
    %17 = tpu.matmul %16, %16, %cst_8 {dimension_numbers = #tpu.dot_dimension_numbers<[2], [2], [1], [1], [0, 0, 0, 1, 1, 1], [0], [0]>} : vector<2x64x64xf32>, vector<2x64x64xf32>, vector<2x64x64xf32> -> vector<2x64x64xf32>
    "tpu.trace_stop"() : () -> ()
    %18 = arith.mulf %17, %17 : vector<2x64x64xf32>
    %cst_9 = arith.constant dense<0.000000e+00> : vector<2x64xf32>
    %19 = vector.multi_reduction <add>, %18, %cst_9 [2] : vector<2x64x64xf32> to vector<2x64xf32>
    %cst_10 = arith.constant dense<0.000000e+00> : vector<2xf32>
    %20 = vector.multi_reduction <add>, %19, %cst_10 [1] : vector<2x64xf32> to vector<2xf32>
    %21 = vector.shape_cast %20 : vector<2xf32> to vector<2x1xf32>
    %22 = arith.mulf %16, %16 : vector<2x64x64xf32>
    %cst_11 = arith.constant dense<0.000000e+00> : vector<2x64xf32>
    %23 = vector.multi_reduction <add>, %22, %cst_11 [2] : vector<2x64x64xf32> to vector<2x64xf32>
    %cst_12 = arith.constant dense<0.000000e+00> : vector<2xf32>
    %24 = vector.multi_reduction <add>, %23, %cst_12 [1] : vector<2x64xf32> to vector<2xf32>
    %25 = vector.shape_cast %24 : vector<2xf32> to vector<2x1xf32>
    %cst_13 = arith.constant 2.000000e+00 : f32
    %26 = vector.broadcast %cst_13 : f32 to vector<2x1xf32>
    %27 = arith.mulf %26, %25 : vector<2x1xf32>
    %28 = arith.subf %21, %27 : vector<2x1xf32>
    %cst_14 = arith.constant 6.400000e+01 : f32
    %29 = vector.broadcast %cst_14 : f32 to vector<2x1xf32>
    %30 = arith.addf %28, %29 : vector<2x1xf32>
    %cst_15 = arith.constant 0.000000e+00 : f32
    %31 = vector.broadcast %cst_15 : f32 to vector<2x1xf32>
    %32 = arith.maximumf %30, %31 : vector<2x1xf32>
    %33 = math.sqrt %32 : vector<2x1xf32>
    %34 = vector.shape_cast %33 : vector<2x1xf32> to vector<1x2x1xf32>
    %cst_16 = arith.constant dense<0.000000e+00> : vector<1xf32>
    %35 = vector.multi_reduction <add>, %34, %cst_16 [1, 2] : vector<1x2x1xf32> to vector<1xf32>
    %36 = vector.shape_cast %35 : vector<1xf32> to vector<1x1x1xf32>
    %37 = vector.extract %36[0, 0, 0] : f32 from vector<1x1x1xf32>
    %c0_17 = arith.constant 0 : index
    %38 = memref.load %arg5[%c0_17] : memref<2xf32, #tpu.memory_space<smem>>
    %39 = arith.addf %38, %15 : f32
    %c0_18 = arith.constant 0 : index
    %40 = memref.load %arg5[%c0_18] : memref<2xf32, #tpu.memory_space<smem>>
    memref.store %39, %arg5[%c0_18] : memref<2xf32, #tpu.memory_space<smem>>
    %c1 = arith.constant 1 : index
    %41 = memref.load %arg5[%c1] : memref<2xf32, #tpu.memory_space<smem>>
    %42 = arith.addf %41, %37 : f32
    %c1_19 = arith.constant 1 : index
    %43 = memref.load %arg5[%c1_19] : memref<2xf32, #tpu.memory_space<smem>>
    memref.store %42, %arg5[%c1_19] : memref<2xf32, #tpu.memory_space<smem>>
    %c0_i32_20 = arith.constant 0 : i32
    %44 = arith.cmpi eq, %arg0, %c0_i32_20 : i32
    %45 = arith.extui %44 : i1 to i32
    %c0_i32_21 = arith.constant 0 : i32
    %46 = arith.cmpi ne, %45, %c0_i32_21 : i32
    scf.if %46 {
      %c0_22 = arith.constant 0 : index
      %47 = memref.load %arg5[%c0_22] : memref<2xf32, #tpu.memory_space<smem>>
      %cst_23 = arith.constant 2.000000e+00 : f32
      %48 = arith.divf %47, %cst_23 : f32
      %c1_24 = arith.constant 1 : index
      %49 = memref.load %arg5[%c1_24] : memref<2xf32, #tpu.memory_space<smem>>
      %cst_25 = arith.constant 2.000000e+00 : f32
      %50 = arith.divf %49, %cst_25 : f32
      %cst_26 = arith.constant 1.000000e-03 : f32
      %51 = arith.mulf %50, %cst_26 : f32
      %52 = arith.addf %48, %51 : f32
      %c0_27 = arith.constant 0 : index
      %c0_28 = arith.constant 0 : index
      %53 = memref.load %arg4[%c0_27, %c0_28] : memref<1x1xf32, #tpu.memory_space<smem>>
      memref.store %52, %arg4[%c0_27, %c0_28] : memref<1x1xf32, #tpu.memory_space<smem>>
    } else {
    }
    return
  }
  func.func @transform_0(%arg0: i32) -> (i32, i32) {
    %c0_i32 = arith.constant 0 : i32
    %c0_i32_0 = arith.constant 0 : i32
    return %arg0, %c0_i32 : i32, i32
  }
  func.func @transform_1(%arg0: i32) -> (i32, i32) {
    %c0_i32 = arith.constant 0 : i32
    %c0_i32_0 = arith.constant 0 : i32
    return %arg0, %c0_i32 : i32, i32
  }
  func.func @transform_2(%arg0: i32) -> (i32, i32, i32) {
    %c0_i32 = arith.constant 0 : i32
    %c0_i32_0 = arith.constant 0 : i32
    %c0_i32_1 = arith.constant 0 : i32
    return %arg0, %c0_i32, %c0_i32_0 : i32, i32, i32
  }
  func.func @transform_3(%arg0: i32) -> (i32, i32) {
    %c0_i32 = arith.constant 0 : i32
    %c0_i32_0 = arith.constant 0 : i32
    %c0_i32_1 = arith.constant 0 : i32
    return %c0_i32, %c0_i32_0 : i32, i32
  }
}

</mosaic_0001>

<bundles_post_ra>
// kernel: tpu_custom_call.1
= control target key start
LH: loop header
LB: loop body
LE: loop exit
PB: predicated region body
PF: predicated region fallthrough
CT: control target
= control target key end

     0   :  { %8 = vsyncpa [#allocation4], 0  ;;  %s1242_s0 = inlined_call_operand.vmem [shape: f32[2,16], index: 0, kind: input, shape index: {}]   ;;  %s1243_s1 = inlined_call_operand.vmem [shape: s32[2,1], index: 1, kind: input, shape index: {}]   ;;  %s1244_s2 = inlined_call_operand.hbm [shape: f32[2,64,64], index: 2, kind: input, shape index: {}]   ;;  %s1245_s3 = inlined_call_operand.hbm [shape: f32[1,1], index: 3, kind: output, shape index: {}]  }
   0x1   :  { %9 = vsyncpa [#allocation5], 0  ;;  %s904_s12 = smov [#allocation3]  }
   0x2   :  { %s19_s13 = sshll.u32 %s904_s12, 4  ;;  %s20_s13 = int_to_ptr.vmem [resolvable:$true] %s19_s13 }
   0x3   :  { %s880_s14 = scalar_lea.vmem %s20_s13, 2048  ;;  %p885_p1 = scmp.lt.s32.totalorder %s20_s13, %s20_s13 }
   0x4   :  { %p881_p0 = scmp.ne.s32.totalorder %s20_s13, %s880_s14  ;;  %p886_p2 = scmp.lt.s32.totalorder %s880_s14, %s880_s14 }
   0x6   :  { %p887_p3 = por %p886_p2, %p885_p1 }
   0x8   :  { %p888_p4 = pnand %p887_p3, %p881_p0 }
   0xa   :  { %891 = shalt.err (!%p888_p4)
}
   0xb   :  { %s905_s15 = smov 128   ;;  %s906_s16 = smov 8  }
   0xc   :  { %25 = dma.hbm_to_vmem [thread:$0]  %s1244_s2, 2048, %s20_s13, [#allocation4], %s905_s15, %s905_s15, %s906_s16  }
   0xd   :  { %900 = dma.done.wait [#allocation4], 2048  }
   0xe   :  { %901 = vsyncadd [#allocation4], 4294965248  ;;  %vm76_vm0 = vcmask 523264   ;;  %v933_v0 = vld [vmem:[#allocation3 + $0x38] sm:$0xff]  ;;  %v937_v2 = vld [vmem:[#allocation3 + $0x30] sm:$0xff]  ;;  %v39_v52 = vlaneseq  ;;  %vm424_vm1 = vcmask 130112  }
   0xf   :  { %v935_v1 = vld [vmem:[#allocation3 + $0x78] sm:$0xff]  ;;  %803 = vmatprep.subr.msk.mxu0 %vm76_vm0, %v933_v0  ;;  %v943_v3 = vld [vmem:[#allocation3 + $0x70] sm:$0xff]  ;;  %v953_v4 = vld [vmem:[#allocation3 + $0x28] sm:$0xff]  ;;  %v520_v39 = vmul.f32 %v937_v2, %v937_v2  ;;  %v521_v43 = vmul.f32 %v933_v0, %v933_v0  ;;  %vm431_vm2 = vcmask 195712   ;;  %vm438_vm3 = vcmask 261312   ;;  %s909_s27 = smov [#allocation6]  }
  0x10   :  { %831 = vmatprep.subr.msk.mxu1 %vm76_vm0, %v935_v1  ;;  %804 = vmatpush3.xpose.msk.msra.mxu0 %vm76_vm0, %v933_v0  ;;  %v955_v5 = vld [vmem:[#allocation3 + $0x68] sm:$0xff]  ;;  %v959_v7 = vld [vmem:[#allocation3] sm:$0xff]  ;;  %v988_v17 = vld [vmem:[#allocation3 + $0x10] sm:$0xff]  ;;  %v519_v35 = vmul.f32 %v953_v4, %v953_v4  ;;  %v528_v41 = vmul.f32 %v943_v3, %v943_v3  ;;  %v529_v45 = vmul.f32 %v935_v1, %v935_v1  ;;  %v1099_v55 = vand.u32 127, %v39_v52 }
  0x11   :  { %832 = vmatpush3.xpose.msk.msra.mxu1 %vm76_vm0, %v935_v1  ;;  %805 = vmatprep.subr.msk.mxu0 %vm76_vm0, %v937_v2  ;;  %v957_v6 = vld [vmem:[#allocation3 + $0x8] sm:$0xff]  ;;  %v963_v9 = vld [vmem:[#allocation3 + $0x40] sm:$0xff]  ;;  %v514_v10 = vmul.f32 %v959_v7, %v959_v7  ;;  %v993_v19 = vld [vmem:[#allocation3 + $0x50] sm:$0xff]  ;;  %v516_v21 = vmul.f32 %v988_v17, %v988_v17  ;;  %v527_v37 = vmul.f32 %v955_v5, %v955_v5  ;;  %v548_v42 = vsel %vm76_vm0, %v520_v39, 0.0 }
  0x12   :  { %833 = vmatprep.subr.msk.mxu1 %vm76_vm0, %v943_v3  ;;  %v961_v8 = vld [vmem:[#allocation3 + $0x48] sm:$0xff]  ;;  %819 = vmatprep.mubr.msk.f32.mxu0 %vm76_vm0, %v959_v7  ;;  %v515_v11 = vmul.f32 %v957_v6, %v957_v6  ;;  %v522_v12 = vmul.f32 %v963_v9, %v963_v9  ;;  %v984_v15 = vld [vmem:[#allocation3 + $0x20] sm:$0xff]  ;;  %v524_v23 = vmul.f32 %v993_v19, %v993_v19  ;;  %v63_v24 = vld [vmem:[#allocation3 + $0x18] sm:$0xff]  ;;  %v545_v38 = vsel %vm76_vm0, %v519_v35, 0.0 }
  0x13   :  { %v523_v13 = vmul.f32 %v961_v8, %v961_v8  ;;  %v530_v14 = vsel %vm76_vm0, %v514_v10, 0.0  ;;  %v986_v16 = vld [vmem:[#allocation3 + $0x60] sm:$0xff]  ;;  %847 = vmatprep.mubr.msk.f32.mxu1 %vm76_vm0, %v963_v9  ;;  %v71_v25 = vld [vmem:[#allocation3 + $0x58] sm:$0xff]  ;;  %v536_v26 = vsel %vm76_vm0, %v516_v21, 0.0  ;;  %v517_v27 = vmul.f32 %v63_v24, %v63_v24 }
  0x14   :  { %806 = vmatpush3.xpose.msk.msra.mxu0 %vm76_vm0, %v937_v2  ;;  %v554_v18 = vsel %vm76_vm0, %v522_v12, 0.0  ;;  %531 = vadd.xlane.f32.xlu0 %v530_v14  ;;  %v533_v20 = vsel %vm76_vm0, %v515_v11, 0.0  ;;  %v560_v28 = vsel %vm76_vm0, %v524_v23, 0.0  ;;  %v525_v29 = vmul.f32 %v71_v25, %v71_v25 }
  0x15   :  { %834 = vmatpush3.xpose.msk.msra.mxu1 %vm76_vm0, %v943_v3  ;;  %807 = vmatprep.subr.msk.mxu0 %vm76_vm0, %v953_v4  ;;  %v557_v22 = vsel %vm76_vm0, %v523_v13, 0.0  ;;  %v539_v30 = vsel %vm76_vm0, %v517_v27, 0.0  ;;  %v518_v31 = vmul.f32 %v984_v15, %v984_v15  ;;  %v526_v33 = vmul.f32 %v986_v16, %v986_v16 }
  0x16   :  { %835 = vmatprep.subr.msk.mxu1 %vm76_vm0, %v955_v5  ;;  %555 = vadd.xlane.f32.xlu1 %v554_v18  ;;  %v563_v32 = vsel %vm76_vm0, %v525_v29, 0.0  ;;  %v569_v40 = vsel %vm76_vm0, %v527_v37, 0.0  ;;  %v572_v44 = vsel %vm76_vm0, %v528_v41, 0.0  ;;  %v551_v46 = vsel %vm76_vm0, %v521_v43, 0.0 }
  0x17   :  { %v542_v34 = vsel %vm76_vm0, %v518_v31, 0.0  ;;  %v566_v36 = vsel %vm76_vm0, %v526_v33, 0.0  ;;  %v575_v47 = vsel %vm76_vm0, %v529_v45, 0.0  ;;  %v1103_v57 = vshrl.u32 %v39_v52, 7 }
  0x18   :  { %808 = vmatpush3.xpose.msk.msra.mxu0 %vm76_vm0, %v953_v4  ;;  %534 = vadd.xlane.f32.xlu0 %v533_v20  ;;  %v419_v59 = vadd.s32 4294967288, %v1099_v55  ;;  %vm445_vm4 = vcmask 326912   ;;  %vm452_vm5 = vcmask 392512   ;;  %vm459_vm6 = vcmask 458112  }
  0x19   :  { %836 = vmatpush3.xpose.msk.msra.mxu1 %vm76_vm0, %v955_v5  ;;  %809 = vmatprep.subr.msk.mxu0 %vm76_vm0, %v984_v15  ;;  %vm466_vm7 = vcmask 523712   ;;  %vm507_vm8 = vcmask 1041409   ;;  %vm510_vm9 = vcmask 517120   ;;  %vm48_vm11 = vcmask 123904  }
  0x1a   :  { %837 = vmatprep.subr.msk.mxu1 %vm76_vm0, %v986_v16  ;;  %558 = vadd.xlane.f32.xlu1 %v557_v22  ;;  %vm688_vm13 = vcmask 1024  }
  0x1c   :  { %810 = vmatpush3.xpose.msk.msra.mxu0 %vm76_vm0, %v984_v15  ;;  %537 = vadd.xlane.f32.xlu0 %v536_v26 }
  0x1d   :  { %838 = vmatpush3.xpose.msk.msra.mxu1 %vm76_vm0, %v986_v16  ;;  %811 = vmatprep.subr.msk.mxu0 %vm76_vm0, %v63_v24 }
  0x1e   :  { %839 = vmatprep.subr.msk.mxu1 %vm76_vm0, %v71_v25  ;;  %561 = vadd.xlane.f32.xlu1 %v560_v28 }
  0x20   :  { %812 = vmatpush3.xpose.msk.msra.mxu0 %vm76_vm0, %v63_v24  ;;  %540 = vadd.xlane.f32.xlu0 %v539_v30 }
  0x21   :  { %840 = vmatpush3.xpose.msk.msra.mxu1 %vm76_vm0, %v71_v25  ;;  %813 = vmatprep.subr.msk.mxu0 %vm76_vm0, %v988_v17 }
  0x22   :  { %841 = vmatprep.subr.msk.mxu1 %vm76_vm0, %v993_v19  ;;  %564 = vadd.xlane.f32.xlu1 %v563_v32  ;;  %v447_v32 = vadd.s32 4294967256, %v1099_v55 }
  0x24   :  { %814 = vmatpush3.xpose.msk.msra.mxu0 %vm76_vm0, %v988_v17  ;;  %543 = vadd.xlane.f32.xlu0 %v542_v34 }
  0x25   :  { %842 = vmatpush3.xpose.msk.msra.mxu1 %vm76_vm0, %v993_v19  ;;  %815 = vmatprep.subr.msk.mxu0 %vm76_vm0, %v957_v6 }
  0x26   :  { %843 = vmatprep.subr.msk.mxu1 %vm76_vm0, %v961_v8  ;;  %567 = vadd.xlane.f32.xlu1 %v566_v36 }
  0x28   :  { %816 = vmatpush3.xpose.msk.msra.mxu0 %vm76_vm0, %v957_v6  ;;  %546 = vadd.xlane.f32.xlu0 %v545_v38 }
  0x29   :  { %844 = vmatpush3.xpose.msk.msra.mxu1 %vm76_vm0, %v961_v8  ;;  %817 = vmatprep.subr.msk.mxu0 %vm76_vm0, %v959_v7 }
  0x2a   :  { %845 = vmatprep.subr.msk.mxu1 %vm76_vm0, %v963_v9  ;;  %570 = vadd.xlane.f32.xlu1 %v569_v40 }
  0x2c   :  { %818 = vmatpush3.xpose.msk.msra.mxu0 %vm76_vm0, %v959_v7  ;;  %549 = vadd.xlane.f32.xlu0 %v548_v42 }
  0x2d   :  { %846 = vmatpush3.xpose.msk.msra.mxu1 %vm76_vm0, %v963_v9  ;;  %v433_v9 = vadd.s32 4294967272, %v1099_v55 }
  0x2e   :  { %573 = vadd.xlane.f32.xlu1 %v572_v44 }
  0x2f   :  { %820 = vmatmul.mubr.msk.f32.vlgmr.msra.gmra.mxu0 %vm76_vm0, %v957_v6  ;;  %v1115_v6 = vsub.s32 %v419_v59, %v1103_v57  ;;  %v1135_v27 = vsub.s32 %v433_v9, %v1103_v57  ;;  %v461_v59 = vadd.s32 4294967240, %v1099_v55 }
  0x30   :  { %848 = vmatmul.mubr.msk.f32.vlgmr.msra.gmra.mxu1 %vm76_vm0, %v961_v8  ;;  %822 = vmatprep.mubr.msk.f32.mxu0 %vm76_vm0, %v988_v17 }
  0x31   :  { %850 = vmatprep.mubr.msk.f32.mxu1 %vm76_vm0, %v993_v19  ;;  %552 = vadd.xlane.f32.xlu0 %v551_v46 }
  0x32   :  { %576 = vadd.xlane.f32.xlu1 %v575_v47 }
  0x33   :  { %823 = vmatmul.mubr.msk.f32.gmra.mxu0 %vm76_vm0, %v63_v24  ;;  %v440_v24 = vadd.s32 4294967264, %v1099_v55 }
  0x34   :  { %851 = vmatmul.mubr.msk.f32.gmra.mxu1 %vm76_vm0, %v71_v25  ;;  %825 = vmatprep.mubr.msk.f32.mxu0 %vm76_vm0, %v984_v15 }
  0x35   :  { %853 = vmatprep.mubr.msk.f32.mxu1 %vm76_vm0, %v986_v16  ;;  %v1148_v40 = vsub.s32 %v440_v24, %v1103_v57 }
  0x37   :  { %826 = vmatmul.mubr.msk.f32.gmra.mxu0 %vm76_vm0, %v953_v4 }
  0x38   :  { %854 = vmatmul.mubr.msk.f32.gmra.mxu1 %vm76_vm0, %v955_v5  ;;  %828 = vmatprep.mubr.msk.f32.mxu0 %vm76_vm0, %v937_v2  ;;  %v1110_v2 = vsub.s32 %v1099_v55, %v1103_v57 }
  0x39   :  { %856 = vmatprep.mubr.msk.f32.mxu1 %vm76_vm0, %v943_v3  ;;  %v426_v3 = vadd.s32 4294967280, %v1099_v55 }
  0x3b   :  { %829 = vmatmul.mubr.msk.f32.gmra.mxu0 %vm76_vm0, %v933_v0  ;;  %v1126_v18 = vsub.s32 %v426_v3, %v1103_v57 }
  0x3c   :  { %857 = vmatmul.mubr.msk.f32.gmra.mxu1 %vm76_vm0, %v935_v1 }
  0x9d   :  { %v532_v48 = vpop.xlane.xlu0 %531 }
  0x9e   :  { %v597_v17 = vrot.slane %v532_v48, %v1110_v2  ;;  %v454_v48 = vadd.s32 4294967248, %v1099_v55 }
  0x9f   :  { %v556_v49 = vpop.xlane.xlu1 %555 }
  0xa0   :  { %v636_v20 = vrot.slane %v556_v49, %v1110_v2  ;;  %v1171_v3 = vsub.s32 %v454_v48, %v1103_v57 }
  0xa1   :  { %v535_v50 = vpop.xlane.xlu0 %534 }
  0xa2   :  { %v601_v22 = vrot.slane %v535_v50, %v1115_v6 }
  0xa3   :  { %v559_v51 = vpop.xlane.xlu1 %558 }
  0xa4   :  { %v640_v21 = vrot.slane %v559_v51, %v1115_v6  ;;  %v602_v37 = vsel %vm424_vm1, %v601_v22, %v597_v17  ;;  %v1159_v51 = vsub.s32 %v447_v32, %v1103_v57 }
  0xa5   :  { %v1095_v53 = vpop.xlane.xlu0 %537 }
  0xa6   :  { %v606_v31 = vrot.slane %v1095_v53, %v1126_v18  ;;  %v641_v36 = vsel %vm424_vm1, %v640_v21, %v636_v20 }
  0xa7   :  { %v1097_v54 = vpop.xlane.xlu1 %561 }
  0xa8   :  { %v645_v30 = vrot.slane %v1097_v54, %v1126_v18  ;;  %v607_v47 = vsel %vm431_vm2, %v606_v31, %v602_v37 }
  0xa9   :  { %v1101_v56 = vpop.xlane.xlu0 %540 }
  0xaa   :  { %v611_v44 = vrot.slane %v1101_v56, %v1135_v27  ;;  %v646_v46 = vsel %vm431_vm2, %v645_v30, %v641_v36 }
  0xab   :  { %v1105_v58 = vpop.xlane.xlu1 %564 }
  0xac   :  { %v650_v43 = vrot.slane %v1105_v58, %v1135_v27 }
  0xad   :  { %v1117_v7 = vpop.xlane.xlu0 %543 }
  0xae   :  { %v616_v56 = vrot.slane %v1117_v7, %v1148_v40 }
  0xaf   :  { %v1120_v10 = vpop.xlane.xlu1 %567 }
  0xb0   :  { %v655_v54 = vrot.slane %v1120_v10, %v1148_v40 }
  0xb1   :  { %v1137_v28 = vpop.xlane.xlu0 %546 }
  0xb3   :  { %v571_v33 = vpop.xlane.xlu1 %570 }
  0xb4   :  { %v660_v7 = vrot.slane %v571_v33, %v1159_v51 }
  0xb5   :  { %v550_v52 = vpop.xlane.xlu0 %549 }
  0xb6   :  { %v626_v17 = vrot.slane %v550_v52, %v1171_v3 }
  0xb7   :  { %v574_v58 = vpop.xlane.xlu1 %573 }
  0xef   :  { %v821_v60 = vpop.f32.mrf.mxu0 }
  0xf0   :  { %v849_v61 = vpop.f32.mrf.mxu1  ;;  %v336_v62 = vmul.f32 %v821_v60, %v821_v60 }
  0xf1   :  { %v344_v63 = vmul.f32 %v849_v61, %v849_v61  ;;  %v167_v0 = vpop.f32.mrf.mxu0 }
  0xf2   :  { %v296_v1 = vpop.f32.mrf.mxu1  ;;  %v335_v4 = vmul.f32 %v167_v0, %v167_v0  ;;  %v354_v5 = vsel %vm76_vm0, %v336_v62, 0.0  ;;  %v651_v62 = vsel %vm438_vm3, %v650_v43, %v646_v46 }
  0xf3   :  { %355 = vadd.xlane.f32.xlu1 %v354_v5  ;;  %v343_v11 = vmul.f32 %v296_v1, %v296_v1  ;;  %v378_v14 = vsel %vm76_vm0, %v344_v63, 0.0  ;;  %v824_v15 = vpop.f32.mrf.mxu0  ;;  %v612_v63 = vsel %vm438_vm3, %v611_v44, %v607_v47  ;;  %v656_v9 = vsel %vm445_vm4, %v655_v54, %v651_v62 }
  0xf4   :  { %v852_v8 = vpop.f32.mrf.mxu1  ;;  %v351_v12 = vsel %vm76_vm0, %v335_v4, 0.0  ;;  %v338_v19 = vmul.f32 %v824_v15, %v824_v15  ;;  %v617_v10 = vsel %vm445_vm4, %v616_v56, %v612_v63  ;;  %v661_v21 = vsel %vm452_vm5, %v660_v7, %v656_v9 }
  0xf5   :  { %v346_v13 = vmul.f32 %v852_v8, %v852_v8  ;;  %352 = vadd.xlane.f32.xlu0 %v351_v12  ;;  %v375_v25 = vsel %vm76_vm0, %v343_v11, 0.0  ;;  %v177_v29 = vpop.f32.mrf.mxu0  ;;  %v621_v8 = vrot.slane %v1137_v28, %v1159_v51  ;;  %v1180_v11 = vsub.s32 %v461_v59, %v1103_v57 }
  0xf6   :  { %v306_v16 = vpop.f32.mrf.mxu1  ;;  %v360_v35 = vsel %vm76_vm0, %v338_v19, 0.0  ;;  %v337_v41 = vmul.f32 %v177_v29, %v177_v29  ;;  %v577_v19 = vpop.xlane.xlu1 %576 }
  0xf7   :  { %379 = vadd.xlane.f32.xlu1 %v378_v14  ;;  %v384_v26 = vsel %vm76_vm0, %v346_v13, 0.0  ;;  %v345_v34 = vmul.f32 %v306_v16, %v306_v16  ;;  %v827_v38 = vpop.f32.mrf.mxu0  ;;  %v553_v14 = vpop.xlane.xlu0 %552  ;;  %v665_v16 = vrot.slane %v574_v58, %v1171_v3  ;;  %v622_v22 = vsel %vm452_vm5, %v621_v8, %v617_v10 }
  0xf8   :  { %v855_v23 = vpop.f32.mrf.mxu1  ;;  %v340_v50 = vmul.f32 %v827_v38, %v827_v38  ;;  %v357_v60 = vsel %vm76_vm0, %v337_v41, 0.0  ;;  %v631_v57 = vrot.slane %v553_v14, %v1180_v11  ;;  %v627_v29 = vsel %vm459_vm6, %v626_v17, %v622_v22  ;;  %v38_v41 = vld [vmem:[%s1243_s1] sm:$0x3] }
  0xf9   :  { %376 = vadd.xlane.f32.xlu0 %v375_v25  ;;  %v348_v42 = vmul.f32 %v855_v23, %v855_v23  ;;  %v381_v49 = vsel %vm76_vm0, %v345_v34, 0.0  ;;  %v187_v53 = vpop.f32.mrf.mxu0  ;;  %v666_v28 = vsel %vm459_vm6, %v665_v16, %v661_v21 }
  0xfa   :  { %v316_v39 = vpop.f32.mrf.mxu1  ;;  %v366_v5 = vsel %vm76_vm0, %v340_v50, 0.0  ;;  %v339_v12 = vmul.f32 %v187_v53, %v187_v53  ;;  %v632_v33 = vsel %vm466_vm7, %v631_v57, %v627_v29  ;;  %v37_v29 = vld [vmem:[%s1242_s0] sm:$0x3] }
  0xfb   :  { %385 = vadd.xlane.f32.xlu1 %v384_v26  ;;  %v390_v61 = vsel %vm76_vm0, %v348_v42, 0.0  ;;  %v830_v0 = vpop.f32.mrf.mxu0  ;;  %v347_v4 = vmul.f32 %v316_v39, %v316_v39  ;;  %v670_v26 = vrot.slane %v577_v19, %v1180_v11  ;;  %v907_v39 = vmov 0  }
  0xfc   :  { %v858_v45 = vpop.f32.mrf.mxu1  ;;  %v363_v24 = vsel %vm76_vm0, %v339_v12, 0.0  ;;  %v342_v31 = vmul.f32 %v830_v0, %v830_v0  ;;  %869 = vset.pattern.permute.xlu0 %v907_v39 }
  0xfd   :  { %361 = vadd.xlane.f32.xlu0 %v360_v35  ;;  %v197_v15 = vpop.f32.mrf.mxu0  ;;  %v387_v20 = vsel %vm76_vm0, %v347_v4, 0.0  ;;  %v350_v30 = vmul.f32 %v858_v45, %v858_v45  ;;  %v671_v34 = vsel %vm466_vm7, %v670_v26, %v666_v28 }
  0xfe   :  { %v326_v1 = vpop.f32.mrf.mxu1  ;;  %v341_v23 = vmul.f32 %v197_v15, %v197_v15  ;;  %v672_v36 = vsel %vm507_vm8, %v671_v34, %v632_v33  ;;  %v372_v37 = vsel %vm76_vm0, %v342_v31, 0.0 }
  0xff   :  { %382 = vadd.xlane.f32.xlu1 %v381_v49  ;;  %v349_v13 = vmul.f32 %v326_v1, %v326_v1  ;;  %v396_v35 = vsel %vm76_vm0, %v350_v30, 0.0  ;;  %v674_v38 = vsel %vm510_vm9, %v672_v36, 0.0 }
 0x100   :  { %v369_v32 = vsel %vm76_vm0, %v341_v23, 0.0 }
 0x101   :  { %358 = vadd.xlane.f32.xlu0 %v357_v60  ;;  %v393_v25 = vsel %vm76_vm0, %v349_v13, 0.0 }
 0x103   :  { %391 = vadd.xlane.f32.xlu1 %v390_v61 }
 0x105   :  { %367 = vadd.xlane.f32.xlu0 %v366_v5 }
 0x107   :  { %388 = vadd.xlane.f32.xlu1 %v387_v20 }
 0x109   :  { %364 = vadd.xlane.f32.xlu0 %v363_v24 }
 0x10b   :  { %394 = vadd.xlane.f32.xlu1 %v393_v25 }
 0x10d   :  { %370 = vadd.xlane.f32.xlu0 %v369_v32 }
 0x10f   :  { %397 = vadd.xlane.f32.xlu1 %v396_v35 }
 0x111   :  { %373 = vadd.xlane.f32.xlu0 %v372_v37 }
 0x115   :  { %675 = vadd.xlane.f32.xlu0 %v674_v38 }
 0x12b   :  { %42 = vperm.xlu0 %869, %v38_v41  }
 0x17c   :  { %v356_v42 = vpop.xlane.xlu1 %355 }
 0x17d   :  { %v423_v60 = vrot.slane %v356_v42, %v1115_v6 }
 0x17e   :  { %v353_v43 = vpop.xlane.xlu0 %352 }
 0x17f   :  { %v418_v53 = vrot.slane %v353_v43, %v1110_v2 }
 0x180   :  { %v380_v44 = vpop.xlane.xlu1 %379 }
 0x181   :  { %v475_v61 = vrot.slane %v380_v44, %v1115_v6  ;;  %v425_v63 = vsel %vm424_vm1, %v423_v60, %v418_v53 }
 0x182   :  { %v377_v45 = vpop.xlane.xlu0 %376 }
 0x183   :  { %v471_v54 = vrot.slane %v377_v45, %v1110_v2 }
 0x184   :  { %v386_v46 = vpop.xlane.xlu1 %385 }
 0x185   :  { %v476_v0 = vsel %vm424_vm1, %v475_v61, %v471_v54 }
 0x186   :  { %v362_v47 = vpop.xlane.xlu0 %361 }
 0x187   :  { %v437_v8 = vrot.slane %v362_v47, %v1135_v27 }
 0x188   :  { %v383_v48 = vpop.xlane.xlu1 %382 }
 0x189   :  { %v480_v56 = vrot.slane %v383_v48, %v1126_v18 }
 0x18a   :  { %v359_v49 = vpop.xlane.xlu0 %358 }
 0x18b   :  { %v430_v58 = vrot.slane %v359_v49, %v1126_v18  ;;  %v481_v1 = vsel %vm431_vm2, %v480_v56, %v476_v0  ;;  %v485_v18 = vrot.slane %v386_v46, %v1135_v27 }
 0x18c   :  { %v392_v50 = vpop.xlane.xlu1 %391 }
 0x18d   :  { %v432_v4 = vsel %vm431_vm2, %v430_v58, %v425_v63  ;;  %v486_v6 = vsel %vm438_vm3, %v485_v18, %v481_v1 }
 0x18e   :  { %v368_v52 = vpop.xlane.xlu0 %367  ;;  %v439_v10 = vsel %vm438_vm3, %v437_v8, %v432_v4 }
 0x18f   :  { %v451_v17 = vrot.slane %v368_v52, %v1159_v51 }
 0x190   :  { %v389_v59 = vpop.xlane.xlu1 %388 }
 0x191   :  { %v490_v2 = vrot.slane %v389_v59, %v1148_v40 }
 0x192   :  { %v365_v62 = vpop.xlane.xlu0 %364 }
 0x193   :  { %v444_v5 = vrot.slane %v365_v62, %v1148_v40  ;;  %v491_v12 = vsel %vm445_vm4, %v490_v2, %v486_v6  ;;  %v495_v40 = vrot.slane %v392_v50, %v1159_v51 }
 0x194   :  { %v395_v7 = vpop.xlane.xlu1 %394 }
 0x195   :  { %v446_v13 = vsel %vm445_vm4, %v444_v5, %v439_v10  ;;  %v500_v14 = vrot.slane %v395_v7, %v1171_v3  ;;  %v496_v20 = vsel %vm452_vm5, %v495_v40, %v491_v12 }
 0x196   :  { %v371_v9 = vpop.xlane.xlu0 %370  ;;  %v453_v21 = vsel %vm452_vm5, %v451_v17, %v446_v13 }
 0x197   :  { %v458_v15 = vrot.slane %v371_v9, %v1171_v3  ;;  %v501_v57 = vsel %vm459_vm6, %v500_v14, %v496_v20 }
 0x198   :  { %v398_v16 = vpop.xlane.xlu1 %397 }
 0x199   :  { %v505_v27 = vrot.slane %v398_v16, %v1180_v11  ;;  %v460_v23 = vsel %vm459_vm6, %v458_v15, %v453_v21 }
 0x19a   :  { %v374_v19 = vpop.xlane.xlu0 %373 }
 0x19b   :  { %v465_v22 = vrot.slane %v374_v19, %v1180_v11  ;;  %v506_v24 = vsel %vm466_vm7, %v505_v27, %v501_v57  ;;  %v908_v11 = vmov 0.0  }
 0x19d   :  { %v467_v3 = vsel %vm466_vm7, %v465_v22, %v460_v23 }
 0x19e   :  { %v508_v25 = vsel %vm507_vm8, %v506_v24, %v467_v3  ;;  %v676_v26 = vpop.xlane.xlu0 %675 }
 0x19f   :  { %v511_v51 = vsel %vm510_vm9, %v508_v25, 0.0  ;;  %v677_v33 = vmul.f32 2.0, %v676_v26 }
 0x1a0   :  { %512 = vadd.xlane.f32.xlu1 %v511_v51 }
 0x1a6   :  { %v43_v28 = vpop.permute.xlu0 %42 }
 0x1a7   :  { %vm44_vm10 = vcmp.eq.s32.totalorder %v1099_v55, %v43_v28 }
 0x1a8   :  { %v736_v30 = vsel %vm44_vm10, 1.0, %v908_v11 }
 0x1a9   :  { %v47_v31 = vmul.f32 %v736_v30, %v37_v29 }
 0x1ab   :  { %v49_v32 = vsel %vm48_vm11, %v47_v31, 0.0 }
 0x1ac   :  { %50 = vadd.xlane.f32.xlu1 %v49_v32 }
 0x229   :  { %v513_v34 = vpop.xlane.xlu1 %512 }
 0x22a   :  { %v678_v35 = vsub.f32 %v513_v34, %v677_v33 }
 0x22c   :  { %v679_v36 = vadd.f32 64.0, %v678_v35 }
 0x22e   :  { %v680_v37 = vmax.f32 %v679_v36, 0.0 }
 0x230   :  { %870 = vrsqrt.f32 %v680_v37  ;;  %vm683_vm12 = vcmp.eq.f32.partialorder %v680_v37, inf  ;;  %v686_v41 = vand.u32 2147483648, %v680_v37  ;;  %vm685_vm14 = vcmp.eq.f32.partialorder %v680_v37, 0.0 }
 0x235   :  { %v51_v42 = vpop.xlane.xlu1 %50 }
 0x236   :  { %v52_v55 = vrot.slane %v51_v42, 4 }
 0x238   :  { %v53_v46 = vadd.f32 %v52_v55, %v51_v42 }
 0x23a   :  { %v54_v47 = vrot.slane %v53_v46, 2 }
 0x23c   :  { %v55_v48 = vadd.f32 %v54_v47, %v53_v46 }
 0x23d   :  { %v871_v38 = vpop.eup %870 }
 0x23e   :  { %v682_v39 = vmul.f32 %v871_v38, %v680_v37  ;;  %v56_v49 = vrot.slane %v55_v48, 1 }
 0x240   :  { %v684_v43 = vsel %vm683_vm12, %v680_v37, %v682_v39  ;;  %v57_v50 = vadd.f32 %v56_v49, %v55_v48 }
 0x241   :  { %v687_v44 = vsel %vm685_vm14, %v686_v41, %v684_v43 }
 0x242   :  { %v689_v45 = vsel %vm688_vm13, %v687_v44, 0.0  ;;  %859 = vpush %v57_v50 }
 0x243   :  { %690 = vadd.xlane.f32.xlu1 %v689_v45 }
 0x273   :  { %s860_s0 = spop %859 }
 0x274   :  { %s59_s21 = ssub.f32 0.0, %s860_s0 }
 0x276   :  { %s713_s24 = smul.f32 0.5, %s59_s21 }
 0x2cc   :  { %v691_v52 = vpop.xlane.xlu1 %690 }
 0x2cd   :  { %v692_v53 = vrot.slane %v691_v52, 4 }
 0x2cf   :  { %v693_v54 = vadd.f32 %v692_v53, %v691_v52 }
 0x2d1   :  { %v694_v56 = vrot.slane %v693_v54, 2 }
 0x2d3   :  { %v695_v58 = vadd.f32 %v694_v56, %v693_v54 }
 0x2d5   :  { %v696_v59 = vrot.slane %v695_v58, 1 }
 0x2d7   :  { %v697_v60 = vadd.f32 %v696_v59, %v695_v58 }
 0x2d9   :  { %861 = vpush %v697_v60 }
 0x30a   :  { %s862_s22 = spop %861 }
 0x30b   :  { %s717_s23 = smul.f32 0.5, %s862_s22 }
 0x30d   :  { %s718_s25 = smul.f32 0.001, %s717_s23 }
 0x30f   :  { %s719_s26 = sadd.f32 %s718_s25, %s713_s24 }
 0x311   :  { %721 = sst [smem:[#allocation6]] %s719_s26 }
 0x312   :  { %729 = dma.smem_to_hbm %s909_s27, 16, %s1245_s3, [#allocation5]  }
 0x313   :  { %902 = dma.done.wait [#allocation5], 16  }
 0x314   :  { %903 = vsyncadd [#allocation5], 4294967280 }
 0x315   :  { %733 = sfence }
 0x316   :  { %734 = vsyncpa [#allocation4], 1 }
 0x317   :  { %735 = vsyncpa [#allocation5], 1 }

</bundles_post_ra>
